<compile_context>
chip_gen: v7x
topology: tpu7x:2x2x1
jax: 0.10.0
libtpu: 0.0.40
codegen_flags: <defaults>
</compile_context>

<pallas_src>
import jax
import jax.numpy as jnp
from jax.experimental import pallas as pl
from jax.experimental.pallas import tpu as pltpu


_SQRT_2_OVER_PI = 0.7978845608028654
_MiB = 1024 * 1024


def _round_up(x, m):
    return ((x + m - 1) // m) * m


def _gelu_tanh_f32(h):
    # tanh-approximate GELU (matches nn.GELU(approximate='tanh')); f32 math,
    # h*h computed once (saves a VALU mul per element vs h + c*h*h*h).
    h2 = h * h
    return 0.5 * h * (1.0 + jnp.tanh(_SQRT_2_OVER_PI * h * (1.0 + 0.044715 * h2)))


def mlp_resident_kernel(x_ref, w1_ref, b1_ref, w2_ref, b2_ref, o_ref):
    """Weights fully VMEM-resident: one row tile per grid step, no accumulator."""
    x = x_ref[...].astype(w1_ref.dtype)  # in-kernel cast, hides under the MXU
    h = jnp.dot(x, w1_ref[...], preferred_element_type=jnp.float32) + b1_ref[...]
    g = _gelu_tanh_f32(h)
    y = jnp.dot(
        g.astype(w2_ref.dtype), w2_ref[...], preferred_element_type=jnp.float32
    ) + b2_ref[...]
    o_ref[...] = y.astype(o_ref.dtype)


def mlp_streaming_kernel(x_ref, w1_ref, b1_ref, w2_ref, b2_ref, o_ref, acc_ref):
    """Hidden dim streamed in chunks (inner grid axis); f32 accumulator scratch."""
    k = pl.program_id(1)

    @pl.when(k == 0)
    def _():
        acc_ref[...] = jnp.zeros_like(acc_ref)

    x = x_ref[...].astype(w1_ref.dtype)
    h = jnp.dot(x, w1_ref[...], preferred_element_type=jnp.float32) + b1_ref[...]
    g = _gelu_tanh_f32(h)
    acc_ref[...] += jnp.dot(
        g.astype(w2_ref.dtype), w2_ref[...], preferred_element_type=jnp.float32
    )

    @pl.when(k == pl.num_programs(1) - 1)
    def _():
        o_ref[...] = (acc_ref[...] + b2_ref[...]).astype(o_ref.dtype)


def mlp_pallas(x, w1, b1, w2, b2, *, tm=None, th=None, matmul_dtype=jnp.bfloat16):
    """x: (B, T, C); w1: (C, 4C); b1: (4C,); w2: (4C, C); b2: (C,)."""
    B, T, C = x.shape
    H = w1.shape[1]
    M = B * T

    x_bytes = jnp.dtype(x.dtype).itemsize
    o_bytes = x_bytes
    w_bytes = jnp.dtype(matmul_dtype).itemsize

    # Lane-dense channel dim: pad C to a multiple of 128 (zero-padded W1 rows /
    # W2 output columns are sliced off). No-op when C % 128 == 0 (real widths).
    C_pad = _round_up(C, 128)

    # ---- generation-aware VMEM budget ---------------------------------------
    try:
        vmem_cap = pltpu.get_tpu_info().vmem_capacity_bytes
    except Exception:
        vmem_cap = 64 * _MiB  # conservative fallback (v7x-sized)
    if vmem_cap >= 128 * _MiB:
        vmem_budget = 100 * _MiB  # v5e / v6e: headroom below 128 MiB physical
    else:
        vmem_budget = 48 * _MiB   # v7x: never request the full 64 MiB

    # ---- row tile ------------------------------------------------------------
    if tm is None:
        tm = 512
    tm = min(tm, _round_up(M, 8))

    def resident_est(tm_, h_pad_):
        return (
            2 * tm_ * C_pad * x_bytes            # x tile (double-buffered)
            + 2 * tm_ * C_pad * o_bytes          # output tile
            + 2 * 2 * C_pad * h_pad_ * w_bytes   # W1 + W2 (2x buffering margin)
            + 2 * (h_pad_ + C_pad) * 4           # biases
            + 3 * tm_ * h_pad_ * 4               # h / g f32 intermediates
        )

    def streaming_est(tm_, th_):
        return (
            2 * tm_ * C_pad * x_bytes
            + 2 * tm_ * C_pad * o_bytes
            + tm_ * C_pad * 4                    # f32 accumulator scratch
            + 2 * C_pad * th_ * w_bytes          # W1 column slab (double-buffered)
            + 2 * th_ * C_pad * w_bytes          # W2 row slab
            + 2 * (th_ + C_pad) * 4
            + 3 * tm_ * th_ * 4                  # h / g f32 intermediates
        )

    h_pad_res = _round_up(H, 128)
    resident = resident_est(tm, h_pad_res) <= vmem_budget
    if not resident and tm > 256:
        tm_small = min(256, _round_up(M, 8))
        if resident_est(tm_small, h_pad_res) <= vmem_budget:
            tm, resident = tm_small, True

    if resident:
        h_pad = h_pad_res
        th = h_pad
    else:
        # Streaming weights: arithmetic intensity per streamed weight byte is
        # ~tm flops/byte, so keep tm >= 1024; shrink th before tm to fit VMEM.
        tm = min(max(tm, 1024), _round_up(M, 8))
        th = min(th if th is not None else 2048, _round_up(H, 128))
        th = max(_round_up(th, 128), 128)
        while streaming_est(tm, th) > vmem_budget and th > 512:
            th = max(_round_up(th // 2, 128), 512)
        while streaming_est(tm, th) > vmem_budget and tm > 256:
            tm = max(tm // 2, 256)
        h_pad = _round_up(H, th)
        # TODO(synk): optionally pipeline_mode=pl.Buffered(3) on the W slabs
        # for v7x when the VMEM estimate allows (deeper DMA buffering).

    m_pad = _round_up(M, tm)

    # ---- operand prep (no extra passes over x at aligned shapes) -------------
    x2 = x.reshape(M, C)
    if m_pad != M or C_pad != C:
        x2 = jnp.pad(x2, ((0, m_pad - M), (0, C_pad - C)))

    # Cast weights only if the caller didn't already persist bf16 copies.
    w1p = w1 if w1.dtype == matmul_dtype else w1.astype(matmul_dtype)
    w2p = w2 if w2.dtype == matmul_dtype else w2.astype(matmul_dtype)
    b1p = b1.astype(jnp.float32)
    b2p = b2.astype(jnp.float32)
    if h_pad != H or C_pad != C:
        # Zero-padded hidden cols: GELU(0)=0 times zero W2 rows -> no effect.
        w1p = jnp.pad(w1p, ((0, C_pad - C), (0, h_pad - H)))
        b1p = jnp.pad(b1p, ((0, h_pad - H),))
        w2p = jnp.pad(w2p, ((0, h_pad - H), (0, C_pad - C)))
        b2p = jnp.pad(b2p, ((0, C_pad - C),))
    b1p = b1p.reshape(1, h_pad)
    b2p = b2p.reshape(1, C_pad)

    if resident:
        est = resident_est(tm, h_pad)
        grid = (m_pad // tm,)
        in_specs = [
            pl.BlockSpec((tm, C_pad), lambda i: (i, 0)),      # x row tile
            pl.BlockSpec((C_pad, h_pad), lambda i: (0, 0)),   # W1 (resident)
            pl.BlockSpec((1, h_pad), lambda i: (0, 0)),       # b1
            pl.BlockSpec((h_pad, C_pad), lambda i: (0, 0)),   # W2 (resident)
            pl.BlockSpec((1, C_pad), lambda i: (0, 0)),       # b2
        ]
        out_specs = pl.BlockSpec((tm, C_pad), lambda i: (i, 0))
        scratch_shapes = []
        kernel = mlp_resident_kernel
        dim_sem = ("parallel",)
        weight_reads = 1
    else:
        est = streaming_est(tm, th)
        grid = (m_pad // tm, h_pad // th)
        in_specs = [
            pl.BlockSpec((tm, C_pad), lambda i, k: (i, 0)),   # x row tile
            pl.BlockSpec((C_pad, th), lambda i, k: (0, k)),   # W1 column slab
            pl.BlockSpec((1, th), lambda i, k: (0, k)),       # b1 slab
            pl.BlockSpec((th, C_pad), lambda i, k: (k, 0)),   # W2 row slab
            pl.BlockSpec((1, C_pad), lambda i, k: (0, 0)),    # b2
        ]
        out_specs = pl.BlockSpec((tm, C_pad), lambda i, k: (i, 0))
        scratch_shapes = [pltpu.VMEM((tm, C_pad), jnp.float32)]
        kernel = mlp_streaming_kernel
        dim_sem = ("parallel", "arbitrary")
        weight_reads = m_pad // tm  # weights re-streamed once per row tile

    vmem_limit = min(max(int(est * 1.25), 32 * _MiB), vmem_budget)

    cost = pl.CostEstimate(
        flops=4 * m_pad * C_pad * h_pad,
        transcendentals=m_pad * h_pad,
        bytes_accessed=(
            m_pad * C_pad * (x_bytes + o_bytes)               # x in, y out
            + weight_reads * 2 * C_pad * h_pad * w_bytes      # W1 + W2 traffic
            + (h_pad + C_pad) * 4                             # biases
        ),
    )

    out2 = pl.pallas_call(
        kernel,
        out_shape=jax.ShapeDtypeStruct((m_pad, C_pad), x.dtype),
        grid_spec=pltpu.PrefetchScalarGridSpec(
            num_scalar_prefetch=0,
            grid=grid,
            in_specs=in_specs,
            out_specs=out_specs,
            scratch_shapes=scratch_shapes,
        ),
        compiler_params=pltpu.CompilerParams(
            dimension_semantics=dim_sem,
            vmem_limit_bytes=vmem_limit,
        ),
        cost_estimate=cost,
    )(x2, w1p, b1p, w2p, b2p)

    if m_pad != M or C_pad != C:
        out2 = out2[:M, :C]
    return out2.reshape(B, T, C)


def init_params(key, n_embd):
    """Deterministic init mirroring nn.Linear defaults: U(-1/sqrt(in), 1/sqrt(in))."""
    hidden = 4 * n_embd
    k1, k2, k3, k4 = jax.random.split(key, 4)
    lim1 = 1.0 / (n_embd ** 0.5)
    lim2 = 1.0 / (hidden ** 0.5)
    # stored as (in_features, out_features) for the kernel's x @ W layout
    w1 = jax.random.uniform(k1, (n_embd, hidden), jnp.float32, -lim1, lim1)
    b1 = jax.random.uniform(k2, (hidden,), jnp.float32, -lim1, lim1)
    w2 = jax.random.uniform(k3, (hidden, n_embd), jnp.float32, -lim2, lim2)
    b2 = jax.random.uniform(k4, (n_embd,), jnp.float32, -lim2, lim2)
    return w1, b1, w2, b2


def mlp_reference(x, w1, b1, w2, b2):
    h = x @ w1 + b1
    g = 0.5 * h * (1.0 + jnp.tanh(_SQRT_2_OVER_PI * (h + 0.044715 * h ** 3)))
    return g @ w2 + b2


if __name__ == "__main__":
    key = jax.random.PRNGKey(0)
    kx, kp = jax.random.split(key)

    B, T, n_embd = 2, 8, 32          # small GPT-like shapes; hidden = 128
    x = jax.random.normal(kx, (B, T, n_embd), jnp.float32)
    w1, b1, w2, b2 = init_params(kp, n_embd)

    # Persist bf16 weight copies outside the per-call path (no per-call cast).
    w1_bf16 = w1.astype(jnp.bfloat16)
    w2_bf16 = w2.astype(jnp.bfloat16)

    out = mlp_pallas(x, w1_bf16, b1, w2_bf16, b2)
    out = jax.block_until_ready(out)

    ref = mlp_reference(x, w1, b1, w2, b2)
    assert out.shape == (B, T, n_embd)
    # bf16 matmul operands with f32 accumulation: loosened tolerance vs f32.
    assert jnp.allclose(out, ref, atol=3e-2, rtol=3e-2), float(
        jnp.max(jnp.abs(out - ref))
    )

    print("KERNEL_OK")
</pallas_src>

<mosaic_0001>
module attributes {stable_mosaic.version = 11 : i64} {
  func.func @mlp_resident_kernel(%arg0: i32, %arg1: memref<16x128xf32, #tpu.memory_space<vmem>>, %arg2: memref<128x128xbf16, #tpu.memory_space<vmem>>, %arg3: memref<1x128xf32, #tpu.memory_space<vmem>>, %arg4: memref<128x128xbf16, #tpu.memory_space<vmem>>, %arg5: memref<1x128xf32, #tpu.memory_space<vmem>>, %arg6: memref<16x128xf32, #tpu.memory_space<vmem>>) attributes {dimension_semantics = [#tpu.dimension_semantics<parallel>], iteration_bounds = array<i64: 1>, scalar_prefetch = 0 : i64, scratch_operands = 0 : i64, tpu.core_type = #tpu.core_type<tc>, window_params = [{transform_indices = @transform_0, window_bounds = array<i64: 16, 128>}, {pipeline_mode = #tpu.pipeline_mode<synchronous>, transform_indices = @transform_1, window_bounds = array<i64: 128, 128>}, {pipeline_mode = #tpu.pipeline_mode<synchronous>, transform_indices = @transform_2, window_bounds = array<i64: 1, 128>}, {pipeline_mode = #tpu.pipeline_mode<synchronous>, transform_indices = @transform_3, window_bounds = array<i64: 128, 128>}, {pipeline_mode = #tpu.pipeline_mode<synchronous>, transform_indices = @transform_4, window_bounds = array<i64: 1, 128>}, {transform_indices = @transform_5, window_bounds = array<i64: 16, 128>}]} {
    %c0 = arith.constant 0 : index
    %c0_0 = arith.constant 0 : index
    %0 = vector.load %arg1[%c0, %c0_0] : memref<16x128xf32, #tpu.memory_space<vmem>>, vector<16x128xf32>
    %1 = arith.truncf %0 : vector<16x128xf32> to vector<16x128xbf16>
    %c0_1 = arith.constant 0 : index
    %c0_2 = arith.constant 0 : index
    %2 = vector.load %arg2[%c0_1, %c0_2] : memref<128x128xbf16, #tpu.memory_space<vmem>>, vector<128x128xbf16>
    %cst = arith.constant dense<0.000000e+00> : vector<16x128xf32>
    %3 = tpu.matmul %1, %2, %cst {dimension_numbers = #tpu.dot_dimension_numbers<[1], [0], [0], [1], [0, 0, 1, 1], [], []>} : vector<16x128xbf16>, vector<128x128xbf16>, vector<16x128xf32> -> vector<16x128xf32>
    %c0_3 = arith.constant 0 : index
    %c0_4 = arith.constant 0 : index
    %4 = vector.load %arg3[%c0_3, %c0_4] : memref<1x128xf32, #tpu.memory_space<vmem>>, vector<1x128xf32>
    %5 = vector.broadcast %4 : vector<1x128xf32> to vector<16x128xf32>
    %6 = arith.addf %3, %5 : vector<16x128xf32>
    %7 = arith.mulf %6, %6 : vector<16x128xf32>
    %cst_5 = arith.constant 5.000000e-01 : f32
    %8 = vector.broadcast %cst_5 : f32 to vector<16x128xf32>
    %9 = arith.mulf %8, %6 : vector<16x128xf32>
    %cst_6 = arith.constant 0.797884583 : f32
    %10 = vector.broadcast %cst_6 : f32 to vector<16x128xf32>
    %11 = arith.mulf %10, %6 : vector<16x128xf32>
    %cst_7 = arith.constant 4.471500e-02 : f32
    %12 = vector.broadcast %cst_7 : f32 to vector<16x128xf32>
    %13 = arith.mulf %12, %7 : vector<16x128xf32>
    %cst_8 = arith.constant 1.000000e+00 : f32
    %14 = vector.broadcast %cst_8 : f32 to vector<16x128xf32>
    %15 = arith.addf %14, %13 : vector<16x128xf32>
    %16 = arith.mulf %11, %15 : vector<16x128xf32>
    %17 = math.tanh %16 : vector<16x128xf32>
    %cst_9 = arith.constant 1.000000e+00 : f32
    %18 = vector.broadcast %cst_9 : f32 to vector<16x128xf32>
    %19 = arith.addf %18, %17 : vector<16x128xf32>
    %20 = arith.mulf %9, %19 : vector<16x128xf32>
    %21 = arith.truncf %20 : vector<16x128xf32> to vector<16x128xbf16>
    %c0_10 = arith.constant 0 : index
    %c0_11 = arith.constant 0 : index
    %22 = vector.load %arg4[%c0_10, %c0_11] : memref<128x128xbf16, #tpu.memory_space<vmem>>, vector<128x128xbf16>
    %cst_12 = arith.constant dense<0.000000e+00> : vector<16x128xf32>
    %23 = tpu.matmul %21, %22, %cst_12 {dimension_numbers = #tpu.dot_dimension_numbers<[1], [0], [0], [1], [0, 0, 1, 1], [], []>} : vector<16x128xbf16>, vector<128x128xbf16>, vector<16x128xf32> -> vector<16x128xf32>
    %c0_13 = arith.constant 0 : index
    %c0_14 = arith.constant 0 : index
    %24 = vector.load %arg5[%c0_13, %c0_14] : memref<1x128xf32, #tpu.memory_space<vmem>>, vector<1x128xf32>
    %25 = vector.broadcast %24 : vector<1x128xf32> to vector<16x128xf32>
    %26 = arith.addf %23, %25 : vector<16x128xf32>
    %c0_15 = arith.constant 0 : index
    %c0_16 = arith.constant 0 : index
    %27 = vector.load %arg6[%c0_15, %c0_16] : memref<16x128xf32, #tpu.memory_space<vmem>>, vector<16x128xf32>
    tpu.vector_store %arg6[%c0_15, %c0_16], %26 {strides = array<i32>} : memref<16x128xf32, #tpu.memory_space<vmem>>, vector<16x128xf32>,
    return
  }
  func.func @transform_0(%arg0: i32) -> (i32, i32) {
    %c0_i32 = arith.constant 0 : i32
    %c0_i32_0 = arith.constant 0 : i32
    return %arg0, %c0_i32 : i32, i32
  }
  func.func @transform_1(%arg0: i32) -> (i32, i32) {
    %c0_i32 = arith.constant 0 : i32
    %c0_i32_0 = arith.constant 0 : i32
    %c0_i32_1 = arith.constant 0 : i32
    return %c0_i32, %c0_i32_0 : i32, i32
  }
  func.func @transform_2(%arg0: i32) -> (i32, i32) {
    %c0_i32 = arith.constant 0 : i32
    %c0_i32_0 = arith.constant 0 : i32
    %c0_i32_1 = arith.constant 0 : i32
    return %c0_i32, %c0_i32_0 : i32, i32
  }
  func.func @transform_3(%arg0: i32) -> (i32, i32) {
    %c0_i32 = arith.constant 0 : i32
    %c0_i32_0 = arith.constant 0 : i32
    %c0_i32_1 = arith.constant 0 : i32
    return %c0_i32, %c0_i32_0 : i32, i32
  }
  func.func @transform_4(%arg0: i32) -> (i32, i32) {
    %c0_i32 = arith.constant 0 : i32
    %c0_i32_0 = arith.constant 0 : i32
    %c0_i32_1 = arith.constant 0 : i32
    return %c0_i32, %c0_i32_0 : i32, i32
  }
  func.func @transform_5(%arg0: i32) -> (i32, i32) {
    %c0_i32 = arith.constant 0 : i32
    %c0_i32_0 = arith.constant 0 : i32
    return %arg0, %c0_i32 : i32, i32
  }
}

</mosaic_0001>

<bundles_post_ra>
// kernel: tpu_custom_call.1
= control target key start
LH: loop header
LB: loop body
LE: loop exit
PB: predicated region body
PF: predicated region fallthrough
CT: control target
= control target key end

     0   :  { %10 = vsyncpa [#allocation3], 0  ;;  %s635_s0 = inlined_call_operand.hbm [shape: f32[16,128], index: 0, kind: input, shape index: {}]   ;;  %s636_s1 = inlined_call_operand.hbm [shape: bf16[128,128], index: 1, kind: input, shape index: {}]   ;;  %s637_s2 = inlined_call_operand.vmem [shape: f32[1,128], index: 2, kind: input, shape index: {}]   ;;  %s638_s3 = inlined_call_operand.hbm [shape: bf16[128,128], index: 3, kind: input, shape index: {}]   ;;  %s639_s4 = inlined_call_operand.vmem [shape: f32[1,128], index: 4, kind: input, shape index: {}]   ;;  %s640_s5 = inlined_call_operand.hbm [shape: f32[16,128], index: 5, kind: output, shape index: {}]  }
   0x1   :  { %11 = vsyncpa [#allocation6], 0 }
   0x2   :  { %12 = vsyncpa [#allocation4], 0  ;;  %s529_s18 = smov [#allocation5]   ;;  %s435_s22 = scalar_lea.hbm %s636_s1, 1024 }
   0x3   :  { %s30_s19 = sshll.u32 %s529_s18, 4  ;;  %p436_p0 = scmp.ne.s32.totalorder %s636_s1, %s435_s22  ;;  %s31_s19 = int_to_ptr.vmem [resolvable:$true] %s30_s19 }
   0x4   :  { %p439_p1 = scmp.lt.u32.totalorder %s435_s22, %s636_s1 }
   0x6   :  { %p441_p2 = pnand %p439_p1, %p436_p0 }
   0x8   :  { %444 = shalt.err (!%p441_p2)
}
   0x9   :  { %s445_s27 = scalar_lea.vmem %s31_s19, 1024  ;;  %p450_p4 = scmp.lt.s32.totalorder %s31_s19, %s31_s19 }
   0xa   :  { %p446_p3 = scmp.ne.s32.totalorder %s31_s19, %s445_s27  ;;  %p451_p5 = scmp.lt.s32.totalorder %s445_s27, %s445_s27 }
   0xc   :  { %p452_p6 = por %p451_p5, %p450_p4 }
   0xe   :  { %p453_p7 = pnand %p452_p6, %p446_p3 }
  0x10   :  { %456 = shalt.err (!%p453_p7)
}
  0x11   :  { %s530_s28 = smov 64   ;;  %s531_s29 = smov 4  }
  0x12   :  { %36 = dma.hbm_to_vmem [thread:$0]  %s636_s1, 1024, %s31_s19, [#allocation6], %s530_s28, %s530_s28, %s531_s29  }
  0x13   :  { %s532_s7 = smov [#allocation2]   ;;  %s457_s11 = scalar_lea.hbm %s635_s0, 256 }
  0x14   :  { %s18_s8 = sshll.u32 %s532_s7, 4  ;;  %p458_p8 = scmp.ne.s32.totalorder %s635_s0, %s457_s11  ;;  %s19_s8 = int_to_ptr.vmem [resolvable:$true] %s18_s8 }
  0x15   :  { %p461_p9 = scmp.lt.u32.totalorder %s457_s11, %s635_s0 }
  0x17   :  { %p463_p10 = pnand %p461_p9, %p458_p8 }
  0x19   :  { %466 = shalt.err (!%p463_p10)
}
  0x1a   :  { %s467_s16 = scalar_lea.vmem %s19_s8, 256  ;;  %p472_p12 = scmp.lt.s32.totalorder %s19_s8, %s19_s8 }
  0x1b   :  { %p468_p11 = scmp.ne.s32.totalorder %s19_s8, %s467_s16  ;;  %p473_p13 = scmp.lt.s32.totalorder %s467_s16, %s467_s16 }
  0x1d   :  { %p474_p0 = por %p473_p13, %p472_p12 }
  0x1f   :  { %p475_p1 = pnand %p474_p0, %p468_p11 }
  0x21   :  { %478 = shalt.err (!%p475_p1)
}
  0x22   :  { %s533_s1 = smov 128   ;;  %s534_s17 = smov 8  }
  0x23   :  { %24 = dma.hbm_to_vmem [thread:$0]  %s635_s0, 256, %s19_s8, [#allocation3], %s533_s1, %s533_s1, %s534_s17  }
  0x24   :  { %s535_s20 = smov [#allocation7]   ;;  %s479_s24 = scalar_lea.hbm %s638_s3, 1024 }
  0x25   :  { %s44_s21 = sshll.u32 %s535_s20, 4  ;;  %p480_p2 = scmp.ne.s32.totalorder %s638_s3, %s479_s24  ;;  %s45_s21 = int_to_ptr.vmem [resolvable:$true] %s44_s21 }
  0x26   :  { %p483_p3 = scmp.lt.u32.totalorder %s479_s24, %s638_s3 }
  0x28   :  { %p485_p4 = pnand %p483_p3, %p480_p2 }
  0x2a   :  { %488 = shalt.err (!%p485_p4)
}
  0x2b   :  { %s489_s6 = scalar_lea.vmem %s45_s21, 1024  ;;  %p494_p6 = scmp.lt.s32.totalorder %s45_s21, %s45_s21 }
  0x2c   :  { %p490_p5 = scmp.ne.s32.totalorder %s45_s21, %s489_s6  ;;  %p495_p7 = scmp.lt.s32.totalorder %s489_s6, %s489_s6 }
  0x2e   :  { %p496_p8 = por %p495_p7, %p494_p6 }
  0x30   :  { %p497_p9 = pnand %p496_p8, %p490_p5 }
  0x32   :  { %500 = shalt.err (!%p497_p9)
}
  0x33   :  { %50 = dma.hbm_to_vmem [thread:$0]  %s638_s3, 1024, %s45_s21, [#allocation6], %s530_s28, %s530_s28, %s531_s29  }
  0x34   :  { %523 = dma.done.wait [#allocation3], 256  }
  0x35   :  { %524 = vsyncadd [#allocation3], 4294967040 }
  0x36   :  { %525 = dma.done.wait [#allocation6], 2048  }
  0x37   :  { %526 = vsyncadd [#allocation6], 4294965248  ;;  %v536_v0 = vmov 0.0   ;;  %vm537_vm0 = vmmov 0   ;;  %v415_v1 = vld [vmem:[#allocation5] sm:$0xff]   ;;  %v416_v2 = vld [vmem:[#allocation5 + $0x8] sm:$0xff]  }
  0x38   :  { %365 = vmatprep.subr.bf16.mxu0 %v536_v0  ;;  %381 = vmatprep.mubr.msk.bf16.mxu0 %vm537_vm0, %v536_v0  ;;  %v417_v3 = vld [vmem:[#allocation5 + $0x10] sm:$0xff]   ;;  %v418_v4 = vld [vmem:[#allocation5 + $0x18] sm:$0xff]   ;;  %v423_v5 = vld [vmem:[#allocation7] sm:$0xff]   ;;  %s538_s8 = smov [#allocation8]  }
  0x39   :  { %385 = vmatprep.subr.bf16.mxu1 %v536_v0  ;;  %401 = vmatprep.mubr.msk.bf16.mxu1 %vm537_vm0, %v536_v0  ;;  %v419_v6 = vld [vmem:[#allocation5 + $0x20] sm:$0xff]   ;;  %v420_v7 = vld [vmem:[#allocation5 + $0x28] sm:$0xff]   ;;  %v421_v8 = vld [vmem:[#allocation5 + $0x30] sm:$0xff]   ;;  %s316_s9 = sshll.u32 %s538_s8, 4  ;;  %s317_s9 = int_to_ptr.vmem [resolvable:$true] %s316_s9 }
  0x3a   :  { %366 = vmatpush3.bf16.msra.mxu0 %v415_v1  ;;  %386 = vmatpush3.bf16.msra.mxu1 %v423_v5  ;;  %v422_v9 = vld [vmem:[#allocation5 + $0x38] sm:$0xff]   ;;  %v63_v10 = vld [vmem:[#allocation2] sm:$0xff]  ;;  %v424_v13 = vld [vmem:[#allocation7 + $0x8] sm:$0xff]   ;;  %s501_s10 = scalar_lea.vmem %s317_s9, 256  ;;  %p506_p11 = scmp.lt.s32.totalorder %s317_s9, %s317_s9 }
  0x3b   :  { %367 = vmatprep.subr.bf16.mxu0 %v536_v0  ;;  %387 = vmatprep.subr.bf16.mxu1 %v536_v0  ;;  %v64_v11 = vld [vmem:[#allocation2 + $0x8] sm:$0xff]  ;;  %v425_v14 = vld [vmem:[#allocation7 + $0x10] sm:$0xff]   ;;  %v427_v16 = vld [vmem:[#allocation7 + $0x20] sm:$0xff]   ;;  %p502_p10 = scmp.ne.s32.totalorder %s317_s9, %s501_s10  ;;  %p507_p12 = scmp.lt.s32.totalorder %s501_s10, %s501_s10 }
  0x3c   :  { %v65_v12 = vpack.c.bf16 %v64_v11, %v63_v10  ;;  %v426_v15 = vld [vmem:[#allocation7 + $0x18] sm:$0xff]   ;;  %v428_v17 = vld [vmem:[#allocation7 + $0x28] sm:$0xff]   ;;  %v429_v18 = vld [vmem:[#allocation7 + $0x30] sm:$0xff]  }
  0x3d   :  { %v430_v19 = vld [vmem:[#allocation7 + $0x38] sm:$0xff]   ;;  %v329_v20 = vld [vmem:[%s637_s2] ss:$0 sm:$0xff]  ;;  %p508_p13 = por %p507_p12, %p506_p11 }
  0x3e   :  { %368 = vmatpush3.bf16.msra.mxu0 %v416_v2  ;;  %388 = vmatpush3.bf16.msra.mxu1 %v424_v13  ;;  %v338_v46 = vld [vmem:[%s639_s4] ss:$0 sm:$0xff] }
  0x3f   :  { %369 = vmatprep.subr.bf16.mxu0 %v536_v0  ;;  %389 = vmatprep.subr.bf16.mxu1 %v536_v0  ;;  %p509_p0 = pnand %p508_p13, %p502_p10 }
  0x42   :  { %370 = vmatpush3.bf16.msra.mxu0 %v417_v3  ;;  %390 = vmatpush3.bf16.msra.mxu1 %v425_v14 }
  0x43   :  { %371 = vmatprep.subr.bf16.mxu0 %v536_v0  ;;  %391 = vmatprep.subr.bf16.mxu1 %v536_v0 }
  0x46   :  { %372 = vmatpush3.bf16.msra.mxu0 %v418_v4  ;;  %392 = vmatpush3.bf16.msra.mxu1 %v426_v15 }
  0x47   :  { %373 = vmatprep.subr.bf16.mxu0 %v536_v0  ;;  %393 = vmatprep.subr.bf16.mxu1 %v536_v0 }
  0x4a   :  { %374 = vmatpush3.bf16.msra.mxu0 %v419_v6  ;;  %394 = vmatpush3.bf16.msra.mxu1 %v427_v16 }
  0x4b   :  { %375 = vmatprep.subr.bf16.mxu0 %v536_v0  ;;  %395 = vmatprep.subr.bf16.mxu1 %v536_v0 }
  0x4e   :  { %376 = vmatpush3.bf16.msra.mxu0 %v420_v7  ;;  %396 = vmatpush3.bf16.msra.mxu1 %v428_v17 }
  0x4f   :  { %377 = vmatprep.subr.bf16.mxu0 %v536_v0  ;;  %397 = vmatprep.subr.bf16.mxu1 %v536_v0 }
  0x52   :  { %378 = vmatpush3.bf16.msra.mxu0 %v421_v8  ;;  %398 = vmatpush3.bf16.msra.mxu1 %v429_v18 }
  0x53   :  { %379 = vmatprep.subr.bf16.mxu0 %v536_v0  ;;  %399 = vmatprep.subr.bf16.mxu1 %v536_v0 }
  0x56   :  { %380 = vmatpush3.bf16.msra.mxu0 %v422_v9  ;;  %400 = vmatpush3.bf16.msra.mxu1 %v430_v19 }
  0x59   :  { %382 = vmatmul.mubr.bf16.vlgmr.msra.gmra.mrb[0].mxu0 %v65_v12 }
 0x12c   :  { %v171_v21 = vpop.f32.mrb[0].mxu0 }
 0x12d   :  { %v172_v22 = vadd.f32 %v329_v20, %v171_v21  ;;  %v383_v23 = vpop.f32.mrb[1].mxu0 }
 0x12e   :  { %v174_v24 = vpop.f32.mrb[2].mxu0 }
 0x12f   :  { %v178_v25 = vmul.f32 %v172_v22, %v172_v22  ;;  %v175_v26 = vadd.f32 %v329_v20, %v174_v24  ;;  %v384_v27 = vpop.f32.mrb[3].mxu0  ;;  %v182_v30 = vmul.f32 0.7978846, %v172_v22  ;;  %v180_v40 = vmul.f32 0.5, %v172_v22 }
 0x131   :  { %v184_v28 = vmul.f32 0.044715, %v178_v25  ;;  %v179_v29 = vmul.f32 %v175_v26, %v175_v26  ;;  %v183_v34 = vmul.f32 0.7978846, %v175_v26  ;;  %v181_v41 = vmul.f32 0.5, %v175_v26 }
 0x133   :  { %v186_v31 = vadd.f32 1.0, %v184_v28  ;;  %v185_v32 = vmul.f32 0.044715, %v179_v29 }
 0x135   :  { %v188_v33 = vmul.f32 %v186_v31, %v182_v30  ;;  %v187_v35 = vadd.f32 1.0, %v185_v32 }
 0x137   :  { %431 = vtanh.f32 %v188_v33  ;;  %v189_v36 = vmul.f32 %v187_v35, %v183_v34 }
 0x139   :  { %433 = vtanh.f32 %v189_v36 }
 0x141   :  { %v432_v37 = vpop.eup %431 }
 0x142   :  { %v192_v38 = vadd.f32 1.0, %v432_v37 }
 0x143   :  { %v434_v39 = vpop.eup %433 }
 0x144   :  { %v193_v42 = vadd.f32 1.0, %v434_v39  ;;  %v194_v43 = vmul.f32 %v192_v38, %v180_v40 }
 0x146   :  { %v195_v44 = vmul.f32 %v193_v42, %v181_v41 }
 0x148   :  { %v196_v45 = vpack.c.bf16 %v195_v44, %v194_v43 }
 0x14a   :  { %402 = vmatmul.mubr.bf16.vlgmr.msra.gmra.mrb[0].mxu1 %v196_v45 }
 0x21d   :  { %v302_v47 = vpop.f32.mrb[0].mxu1 }
 0x21e   :  { %v303_v48 = vadd.f32 %v338_v46, %v302_v47  ;;  %v403_v49 = vpop.f32.mrb[1].mxu1 }
 0x21f   :  { %v305_v50 = vpop.f32.mrb[2].mxu1 }
 0x220   :  { %309 = vst [vmem:[#allocation8] sm:$0xff] %v303_v48  ;;  %v306_v51 = vadd.f32 %v338_v46, %v305_v50  ;;  %v404_v52 = vpop.f32.mrb[3].mxu1 }
 0x222   :  { %310 = vst [vmem:[#allocation8 + $0x8] sm:$0xff] %v306_v51 }
 0x223   :  { %512 = shalt.err (!%p509_p0)
}
 0x224   :  { %s513_s12 = scalar_lea.hbm %s640_s5, 256 }
 0x225   :  { %p514_p1 = scmp.ne.s32.totalorder %s640_s5, %s513_s12  ;;  %p517_p2 = scmp.lt.u32.totalorder %s513_s12, %s640_s5 }
 0x227   :  { %p519_p3 = pnand %p517_p2, %p514_p1 }
 0x229   :  { %522 = shalt.err (!%p519_p3)
}
 0x22a   :  { %322 = dma.vmem_to_hbm [thread:$0]  %s317_s9, 256, %s640_s5, [#allocation4], %s533_s1, %s533_s1, %s534_s17  }
 0x22b   :  { %527 = dma.done.wait [#allocation4], 256  }
 0x22c   :  { %528 = vsyncadd [#allocation4], 4294967040 }
 0x22d   :  { %326 = vsyncpa [#allocation3], 1 }
 0x22e   :  { %327 = vsyncpa [#allocation6], 1 }
 0x22f   :  { %328 = vsyncpa [#allocation4], 1 }

</bundles_post_ra>
